<compile_context>
chip_gen: v6e
topology: v6e:2x2x1
jax: 0.10.0
libtpu: 0.0.40
codegen_flags: <defaults>
</compile_context>

<pallas_src>
import functools

import jax
import jax.numpy as jnp
from jax.experimental import pallas as pl
from jax.experimental.pallas import tpu as pltpu

EPS = 1e-5
F32 = jnp.float32
BF16 = jnp.bfloat16

LANE = 128                    # channel padding granularity (TPU lane width)
MAX_TM = 1024
MAX_TK = 1024
VMEM_LIMIT = 32 * 1024 * 1024


# ----------------------------------------------------------------------------
# helpers
# ----------------------------------------------------------------------------
def _round_up(x, m):
    return ((x + m - 1) // m) * m


def _pad_to(x, m, axis):
    pad = (-x.shape[axis]) % m
    if pad == 0:
        return x
    widths = [(0, 0)] * x.ndim
    widths[axis] = (0, pad)
    return jnp.pad(x, widths)


def _pick_tile(dim, cap, align):
    """Largest tile <= cap that divides dim exactly; else full (rounded) dim if small;
    else cap (generic padding fallback, unused by this network)."""
    if dim <= cap:
        return _round_up(dim, align)
    t = cap - (cap % align)
    while t >= align:
        if dim % t == 0:
            return t
        t -= align
    return cap


# ----------------------------------------------------------------------------
# Fused matmul kernel: out = maybe_relu(A @ B [+ bias] [+ residual])
# A (M,K) bf16 rows, B (K,N) bf16 weights (BN scale pre-folded), f32 accumulator
# over the K grid axis, epilogue (bias / residual / relu / cast) on last K step.
# ----------------------------------------------------------------------------
def _mm_kernel(*refs, relu, has_res, has_bias):
    a_ref, b_ref = refs[0], refs[1]
    idx = 2
    r_ref = None
    c_ref = None
    if has_res:
        r_ref = refs[idx]
        idx += 1
    if has_bias:
        c_ref = refs[idx]
        idx += 1
    o_ref, acc_ref = refs[idx], refs[idx + 1]

    @pl.when(pl.program_id(2) == 0)
    def _():
        acc_ref[...] = jnp.zeros_like(acc_ref)

    acc_ref[...] += jnp.dot(a_ref[...], b_ref[...],
                            preferred_element_type=jnp.float32)

    @pl.when(pl.program_id(2) == pl.num_programs(2) - 1)
    def _():
        y = acc_ref[...]
        if has_bias:
            y = y + c_ref[...]
        if has_res:
            y = y + r_ref[...].astype(jnp.float32)
        if relu:
            y = jnp.maximum(y, 0.0)
        o_ref[...] = y.astype(o_ref.dtype)


def matmul_fused(a, b, *, relu, residual=None, bias=None, out_dtype=BF16):
    """maybe_relu(a @ b [+ bias] [+ residual]) with f32 accumulation over a K grid."""
    M, K = a.shape
    Kb, N = b.shape
    assert K == Kb, (K, Kb)

    tm = _pick_tile(M, MAX_TM, 16)      # divides M for every conv in this network
    tk = _pick_tile(K, MAX_TK, 128)     # divides K (full-K single step for 1x1 convs)
    Mp, Kp = _round_up(M, tm), _round_up(K, tk)
    mtiles = Mp // tm

    # Lane-dense output tiles; keep Mtiles*Ntiles >= 2 so both v7x TCs get work.
    tn = _pick_tile(N, 512 if mtiles == 1 else 256, 128)
    if mtiles * (_round_up(N, tn) // tn) < 2 and N >= 256:
        tn = 256 if (N % 256 == 0 and N >= 512) else 128
    Np = _round_up(N, tn)

    a = _pad_to(_pad_to(a.astype(BF16), tm, 0), tk, 1)
    b = _pad_to(_pad_to(b.astype(BF16), tk, 0), tn, 1)

    inputs = [a, b]
    in_specs = [pl.BlockSpec((tm, tk), lambda i, j, k: (i, k)),
                pl.BlockSpec((tk, tn), lambda i, j, k: (k, j))]
    has_res = residual is not None
    has_bias = bias is not None
    if has_res:
        r = _pad_to(_pad_to(residual.reshape(M, N).astype(BF16), tm, 0), tn, 1)
        inputs.append(r)
        in_specs.append(pl.BlockSpec((tm, tn), lambda i, j, k: (i, j)))
    if has_bias:
        c = _pad_to(bias.reshape(1, N).astype(F32), tn, 1)
        inputs.append(c)
        in_specs.append(pl.BlockSpec((1, tn), lambda i, j, k: (0, j)))

    out = pl.pallas_call(
        functools.partial(_mm_kernel, relu=relu, has_res=has_res,
                          has_bias=has_bias),
        out_shape=jax.ShapeDtypeStruct((Mp, Np), out_dtype),
        grid_spec=pltpu.PrefetchScalarGridSpec(
            num_scalar_prefetch=0,
            grid=(Mp // tm, Np // tn, Kp // tk),
            in_specs=in_specs,
            out_specs=pl.BlockSpec((tm, tn), lambda i, j, k: (i, j)),
            scratch_shapes=[pltpu.VMEM((tm, tn), jnp.float32)]),
        compiler_params=pltpu.CompilerParams(
            dimension_semantics=("parallel", "parallel", "arbitrary"),
            vmem_limit_bytes=VMEM_LIMIT),
    )(*inputs)
    if (Mp, Np) != (M, N):
        out = out[:M, :N]
    return out


# ----------------------------------------------------------------------------
# Conv / pool wrappers (layout plumbing in plain JAX, fused under jit)
# ----------------------------------------------------------------------------
def _im2col_nhwc(x, kh, kw, stride, padding):
    """x NHWC -> rows (N*Ho*Wo, kh*kw*C), feature order (kh, kw, C)."""
    N, H, W, C = x.shape
    xp = jnp.pad(x, ((0, 0), (padding, padding), (padding, padding), (0, 0)))
    Ho = (H + 2 * padding - kh) // stride + 1
    Wo = (W + 2 * padding - kw) // stride + 1
    taps = []
    for i in range(kh):
        for j in range(kw):
            taps.append(jax.lax.slice(
                xp, (0, i, j, 0),
                (N, i + stride * (Ho - 1) + 1, j + stride * (Wo - 1) + 1, C),
                (1, stride, stride, 1)))
    rows = jnp.concatenate(taps, axis=-1).reshape(N * Ho * Wo, kh * kw * C)
    return rows, Ho, Wo


def conv2d_bn(x, wmat, kh, kw, stride, padding, relu, residual=None):
    """Conv (no bias) + folded eval-BN (+ fused residual add) + optional ReLU.

    x: NHWC bf16 with channels already padded to a multiple of 128;
    wmat: (kh*kw*Cin_pad, Cout_pad) bf16 with BN scale folded;
    residual: NHWC (N, Ho, Wo, Cout_pad) added inside the matmul epilogue.
    """
    N, H, W, cin_p = x.shape
    cout_p = wmat.shape[1]
    assert wmat.shape[0] == kh * kw * cin_p, (wmat.shape, kh, kw, cin_p)
    if kh == 1 and kw == 1 and padding == 0:
        if stride > 1:
            x = x[:, ::stride, ::stride, :]
        Ho, Wo = x.shape[1], x.shape[2]
        rows = x.reshape(N * Ho * Wo, cin_p)
    else:
        rows, Ho, Wo = _im2col_nhwc(x, kh, kw, stride, padding)
    res = None
    if residual is not None:
        res = residual.reshape(N * Ho * Wo, cout_p)
    out = matmul_fused(rows, wmat, relu=relu, residual=res)
    return out.reshape(N, Ho, Wo, cout_p)


def maxpool2d_3x3s2p1(x):
    """MaxPool2d(3, stride=2, padding=1) on NHWC via a 9-way maximum tree.

    Zero padding is valid only because the input is post-ReLU (>= 0)."""
    N, H, W, C = x.shape
    xp = jnp.pad(x, ((0, 0), (1, 1), (1, 1), (0, 0)))
    Ho = (H + 2 - 3) // 2 + 1
    Wo = (W + 2 - 3) // 2 + 1
    out = None
    for i in range(3):
        for j in range(3):
            s = jax.lax.slice(
                xp, (0, i, j, 0),
                (N, i + 2 * (Ho - 1) + 1, j + 2 * (Wo - 1) + 1, C),
                (1, 2, 2, 1))
            out = s if out is None else jnp.maximum(out, s)
    return out


# ----------------------------------------------------------------------------
# ResNet-152 parameters (eval-BN folded, channel-padded weights)
# ----------------------------------------------------------------------------
def kaiming_conv(key, cout, cin, kh, kw):
    # kaiming_normal_(mode='fan_out', nonlinearity='relu')
    fan_out = cout * kh * kw
    std = (2.0 / fan_out) ** 0.5
    return jax.random.normal(key, (cout, cin, kh, kw), F32) * std


def prep_conv(w, cin_pad):
    """(O, Cin, kh, kw) f32 -> (kh*kw*cin_pad, O_pad) bf16.

    Eval-BN scale (gamma=1, beta=0, mean=0, var=1) folded in; Cin zero-padded to
    cin_pad (must match the padded channel count of the incoming activation) and
    Cout zero-padded to a multiple of 128 so activations stay lane-aligned."""
    o, cin, kh, kw = w.shape
    cout_p = _round_up(o, LANE)
    scale = 1.0 / (1.0 + EPS) ** 0.5
    w = w.astype(F32) * scale
    w = jnp.pad(w, ((0, cout_p - o), (0, cin_pad - cin), (0, 0), (0, 0)))
    wmat = w.transpose(2, 3, 1, 0).reshape(kh * kw * cin_pad, cout_p)
    return wmat.astype(BF16)


def bottleneck_params(key, inplanes, planes, stride, downsample):
    k = jax.random.split(key, 4)
    in_p = _round_up(inplanes, LANE)
    mid_p = _round_up(planes, LANE)
    return {
        "w1": prep_conv(kaiming_conv(k[0], planes, inplanes, 1, 1), in_p),
        "w2": prep_conv(kaiming_conv(k[1], planes, planes, 3, 3), mid_p),
        "w3": prep_conv(kaiming_conv(k[2], planes * 4, planes, 1, 1), mid_p),
        "stride": stride,
        "down": (prep_conv(kaiming_conv(k[3], planes * 4, inplanes, 1, 1), in_p)
                 if downsample else None),
    }


def init_params(key):
    ks = jax.random.split(key, 7)
    params = {"conv1": prep_conv(kaiming_conv(ks[0], 64, 3, 7, 7), cin_pad=3)}
    layers_cfg = [(64, 3, 1), (128, 8, 2), (256, 36, 2), (512, 3, 2)]  # ResNet-152
    inplanes = 64
    layers = []
    for idx, (planes, blocks, stride) in enumerate(layers_cfg):
        bkeys = jax.random.split(ks[idx + 1], blocks)
        blist = [bottleneck_params(bkeys[0], inplanes, planes, stride, True)]
        inplanes = planes * 4
        for b in range(1, blocks):
            blist.append(bottleneck_params(bkeys[b], inplanes, planes, 1, False))
        layers.append(blist)
    params["layers"] = layers
    fk1, fk2 = jax.random.split(ks[5], 2)
    bound = 1.0 / (2048 ** 0.5)
    params["fc_w"] = jax.random.uniform(fk1, (1000, 2048), F32, -bound, bound).T
    params["fc_b"] = jax.random.uniform(fk2, (1000,), F32, -bound, bound)
    return params


# ----------------------------------------------------------------------------
# Forward (stage0..stage3 composition == full ResNet-152 forward)
# ----------------------------------------------------------------------------
@jax.jit
def _stem(x, conv1_w):
    x = conv2d_bn(x, conv1_w, 7, 7, stride=2, padding=3, relu=True)
    return maxpool2d_3x3s2p1(x)


@functools.partial(jax.jit, static_argnames=("stride",))
def _bottleneck(x, w1, w2, w3, wd, stride):
    out = conv2d_bn(x, w1, 1, 1, stride=1, padding=0, relu=True)
    out = conv2d_bn(out, w2, 3, 3, stride=stride, padding=1, relu=True)
    if wd is not None:
        identity = conv2d_bn(x, wd, 1, 1, stride=stride, padding=0, relu=False)
    else:
        identity = x
    # conv3 + BN + residual add + ReLU fused in a single Pallas matmul epilogue.
    return conv2d_bn(out, w3, 1, 1, stride=1, padding=0, relu=True,
                     residual=identity)


@jax.jit
def _head(x, fc_w, fc_b):
    # AvgPool2d(7) on a 7x7 map == spatial mean; FC head via XLA dot (M=2 rows would
    # waste >90% of an MXU pass and 32 grid steps in Pallas).
    pooled = x.astype(F32).mean(axis=(1, 2))          # (N, 2048)
    return pooled @ fc_w + fc_b                       # (N, 1000) f32


def resnet152_forward(params, x_nchw):
    x = jnp.transpose(x_nchw, (0, 2, 3, 1)).astype(BF16)   # NHWC once, bf16
    x = _stem(x, params["conv1"])
    for layer in params["layers"]:
        for bp in layer:
            x = _bottleneck(x, bp["w1"], bp["w2"], bp["w3"], bp["down"],
                            stride=bp["stride"])
    return _head(x, params["fc_w"], params["fc_b"])


if __name__ == "__main__":
    # Input implied by the module: NCHW, 3 channels, 224x224 spatial (AvgPool2d(7)
    # after 5 stride-2 reductions requires 224). Batch kept small (2).
    x = jax.random.normal(jax.random.PRNGKey(0), (2, 3, 224, 224), F32)
    params = init_params(jax.random.PRNGKey(1))
    out = resnet152_forward(params, x)
    out = jax.block_until_ready(out)
    assert out.shape == (2, 1000) and out.dtype == jnp.float32
    assert bool(jnp.all(jnp.isfinite(out)))
    print("KERNEL_OK")
</pallas_src>

<mosaic_0001>
module attributes {stable_mosaic.version = 11 : i64} {
  func.func @_mm_kernel(%arg0: i32, %arg1: i32, %arg2: i32, %arg3: memref<896x256xbf16, #tpu.memory_space<vmem>>, %arg4: memref<256x128xbf16, #tpu.memory_space<vmem>>, %arg5: memref<896x128xbf16, #tpu.memory_space<vmem>>, %arg6: memref<896x128xf32, #tpu.memory_space<vmem>>) attributes {dimension_semantics = [#tpu.dimension_semantics<parallel>, #tpu.dimension_semantics<parallel>, #tpu.dimension_semantics<arbitrary>], iteration_bounds = array<i64: 28, 1, 1>, scalar_prefetch = 0 : i64, scratch_operands = 1 : i64, tpu.core_type = #tpu.core_type<tc>, window_params = [{transform_indices = @transform_0, window_bounds = array<i64: 896, 256>}, {transform_indices = @transform_1, window_bounds = array<i64: 256, 128>}, {transform_indices = @transform_2, window_bounds = array<i64: 896, 128>}]} {
    %c0_i32 = arith.constant 0 : i32
    %0 = arith.cmpi eq, %arg2, %c0_i32 : i32
    %1 = arith.extui %0 : i1 to i32
    %c0_i32_0 = arith.constant 0 : i32
    %2 = arith.cmpi ne, %1, %c0_i32_0 : i32
    scf.if %2 {
      %cst_10 = arith.constant 0.000000e+00 : f32
      %12 = vector.broadcast %cst_10 : f32 to vector<896x128xf32>
      %c0_11 = arith.constant 0 : index
      %c0_12 = arith.constant 0 : index
      %13 = vector.load %arg6[%c0_11, %c0_12] : memref<896x128xf32, #tpu.memory_space<vmem>>, vector<896x128xf32>
      tpu.vector_store %arg6[%c0_11, %c0_12], %12 {strides = array<i32>} : memref<896x128xf32, #tpu.memory_space<vmem>>, vector<896x128xf32>,
    } else {
    }
    %c0 = arith.constant 0 : index
    %c0_1 = arith.constant 0 : index
    %3 = vector.load %arg6[%c0, %c0_1] : memref<896x128xf32, #tpu.memory_space<vmem>>, vector<896x128xf32>
    %c0_2 = arith.constant 0 : index
    %c0_3 = arith.constant 0 : index
    %4 = vector.load %arg3[%c0_2, %c0_3] : memref<896x256xbf16, #tpu.memory_space<vmem>>, vector<896x256xbf16>
    %c0_4 = arith.constant 0 : index
    %c0_5 = arith.constant 0 : index
    %5 = vector.load %arg4[%c0_4, %c0_5] : memref<256x128xbf16, #tpu.memory_space<vmem>>, vector<256x128xbf16>
    %cst = arith.constant dense<0.000000e+00> : vector<896x128xf32>
    %6 = tpu.matmul %4, %5, %cst {dimension_numbers = #tpu.dot_dimension_numbers<[1], [0], [0], [1], [0, 0, 1, 1], [], []>} : vector<896x256xbf16>, vector<256x128xbf16>, vector<896x128xf32> -> vector<896x128xf32>
    %7 = arith.addf %3, %6 : vector<896x128xf32>
    %c0_6 = arith.constant 0 : index
    %c0_7 = arith.constant 0 : index
    %8 = vector.load %arg6[%c0_6, %c0_7] : memref<896x128xf32, #tpu.memory_space<vmem>>, vector<896x128xf32>
    tpu.vector_store %arg6[%c0_6, %c0_7], %7 {strides = array<i32>} : memref<896x128xf32, #tpu.memory_space<vmem>>, vector<896x128xf32>,
    %c0_i32_8 = arith.constant 0 : i32
    %9 = arith.cmpi eq, %arg2, %c0_i32_8 : i32
    %10 = arith.extui %9 : i1 to i32
    %c0_i32_9 = arith.constant 0 : i32
    %11 = arith.cmpi ne, %10, %c0_i32_9 : i32
    scf.if %11 {
      %c0_10 = arith.constant 0 : index
      %c0_11 = arith.constant 0 : index
      %12 = vector.load %arg6[%c0_10, %c0_11] : memref<896x128xf32, #tpu.memory_space<vmem>>, vector<896x128xf32>
      %cst_12 = arith.constant 0.000000e+00 : f32
      %13 = vector.broadcast %cst_12 : f32 to vector<896x128xf32>
      %14 = arith.maximumf %12, %13 : vector<896x128xf32>
      %15 = arith.truncf %14 : vector<896x128xf32> to vector<896x128xbf16>
      %c0_13 = arith.constant 0 : index
      %c0_14 = arith.constant 0 : index
      %16 = vector.load %arg5[%c0_13, %c0_14] : memref<896x128xbf16, #tpu.memory_space<vmem>>, vector<896x128xbf16>
      tpu.vector_store %arg5[%c0_13, %c0_14], %15 {strides = array<i32>} : memref<896x128xbf16, #tpu.memory_space<vmem>>, vector<896x128xbf16>,
    } else {
    }
    return
  }
  func.func @transform_0(%arg0: i32, %arg1: i32, %arg2: i32) -> (i32, i32) {
    %c0_i32 = arith.constant 0 : i32
    return %arg0, %arg2 : i32, i32
  }
  func.func @transform_1(%arg0: i32, %arg1: i32, %arg2: i32) -> (i32, i32) {
    %c0_i32 = arith.constant 0 : i32
    return %arg2, %arg1 : i32, i32
  }
  func.func @transform_2(%arg0: i32, %arg1: i32, %arg2: i32) -> (i32, i32) {
    %c0_i32 = arith.constant 0 : i32
    return %arg0, %arg1 : i32, i32
  }
}

</mosaic_0001>

<bundles_post_ra>
// kernel: _stem.1
= control target key start
LH: loop header
LB: loop body
LE: loop exit
PB: predicated region body
PF: predicated region fallthrough
CT: control target
= control target key end

     0   :  { %s3829_s9 = smov 0   ;;  %s3831_s10 = smov 0   ;;  %s4118_s0 = inlined_call_operand.vmem [shape: bf16[25088,256], index: 0, kind: input, shape index: {}]   ;;  %s4119_s1 = inlined_call_operand.vmem [shape: bf16[256,128], index: 1, kind: input, shape index: {}]   ;;  %s4120_s2 = inlined_call_operand.vmem [shape: bf16[25088,128], index: 2, kind: output, shape index: {}]  }
   0x1   :  { %s3833_s11 = smov 0  }
   0x2 LB: > { %s31_s12 = sadd.s32 1, %s3807_s10  ;;  %p2854_p0 = scmp.ge.s32.totalorder %s3811_s11, 1  ;;  %s3811_s11 = sphi %s3833_s11, %s12_s11   ;;  %s3807_s10 = sphi %s3831_s10, %s4122_s10   ;;  %s3803_s9 = sphi %s3829_s9, %s4121_s9  }
   0x3   : > { %p33_p1 = scmp.ge.s32.totalorder %s31_s12, 28  ;;  %p158_p2 = scmp.lt.s32.totalorder %s3811_s11, 29 }
   0x5   : > { %s4124_s12 = smov (%p33_p1, %s31_s12), 0  ;;  %p159_p3 = pnand %p2854_p0, %p158_p2 }
   0x6   : > { %s196_s15 = smul.u32 (!%p159_p3), 112, %s3803_s9 }
   0x7   : > { %162 = sbr.rel (%p159_p3) target bundleno = 495 (0x1ef), region = 28 }
   0x8   : > { %p198_p4 = scmp.lt.s32.totalorder (!%p159_p3), %s196_s15, 3135 }
   0xc   : > { %v3605_v0 = vld [vmem:[%s4119_s1 + $0x38] sm:$0xff]   ;;  %v3813_v1 = vmov 0   ;;  %v3606_v2 = vld [vmem:[%s4119_s1 + $0x30] sm:$0xff]   ;;  %v3607_v3 = vld [vmem:[%s4119_s1 + $0x28] sm:$0xff]   ;;  %s4126_s15 = smov (!%p198_p4, %s196_s15), 3135 }
   0xd   : > { %1255 = vmatprep.subr.bf16.mxu0 %v3813_v1  ;;  %3548 = vmatprep.subr.bf16.mxu1 %v3813_v1  ;;  %v3608_v4 = vld [vmem:[%s4119_s1 + $0x20] sm:$0xff]   ;;  %s3100_s22 = sshll.u32 %s4126_s15, 3  ;;  %v3609_v5 = vld [vmem:[%s4119_s1 + $0x18] sm:$0xff]   ;;  %v3610_v7 = vld [vmem:[%s4119_s1 + $0x10] sm:$0xff]   ;;  %s2857_s26 = sshll.u32 %s4126_s15, 2 }
   0xe   : > { %1256 = vmatpush1.bf16.msra.mxu0 %v3605_v0  ;;  %3564 = vmatpush1.bf16.msra.mxu1 %v3605_v0  ;;  %s3876_s27 = scalar_lea.vmem %s4118_s0, %s3100_s22  ;;  %v3611_v9 = vld [vmem:[%s4119_s1 + $0x8] sm:$0xff]   ;;  %v3612_v10 = vld [vmem:[%s4119_s1] sm:$0xff]   ;;  %v3613_v11 = vld [vmem:[%s4119_s1 + $0x78] sm:$0xff]   ;;  %s4045_s30 = scalar_lea.vmem %s4120_s2, %s2857_s26 }
   0xf   : > { %1257 = vmatprep.subr.bf16.mxu0 %v3813_v1  ;;  %3549 = vmatprep.subr.bf16.mxu1 %v3813_v1  ;;  %v3623_v6 = vld [vmem:[%s3876_s27 + $0x4] ss:$8 sps:$4 sm:$0xff]   ;;  %v3614_v12 = vld [vmem:[%s4119_s1 + $0x70] sm:$0xff]   ;;  %v3617_v15 = vld [vmem:[%s4119_s1 + $0x58] sm:$0xff]  }
  0x10   : > { %v3626_v8 = vld [vmem:[%s3876_s27 + $0x1c4] ss:$8 sps:$4 sm:$0xff]   ;;  %1287 = vmatprep.mubr.bf16.mxu0 %v3623_v6  ;;  %v3618_v16 = vld [vmem:[%s4119_s1 + $0x50] sm:$0xff]   ;;  %v3621_v19 = vld [vmem:[%s3876_s27] ss:$8 sps:$4 sm:$0xff]  }
  0x11   : > { %1511 = vmatprep.mubr.bf16.mxu1 %v3626_v8  ;;  %v3615_v13 = vld [vmem:[%s4119_s1 + $0x68] sm:$0xff]   ;;  %v3616_v14 = vld [vmem:[%s4119_s1 + $0x60] sm:$0xff]   ;;  %v3627_v21 = vld [vmem:[%s3876_s27 + $0x14] ss:$8 sps:$4 sm:$0xff]  }
  0x12   : > { %1258 = vmatpush1.bf16.msra.mxu0 %v3606_v2  ;;  %3565 = vmatpush1.bf16.msra.mxu1 %v3606_v2  ;;  %v3619_v17 = vld [vmem:[%s4119_s1 + $0x48] sm:$0xff]   ;;  %v3620_v18 = vld [vmem:[%s4119_s1 + $0x40] sm:$0xff]   ;;  %v3629_v22 = vld [vmem:[%s3876_s27 + $0x1d4] ss:$8 sps:$4 sm:$0xff]  }
  0x13   : > { %1259 = vmatprep.subr.bf16.mxu0 %v3813_v1  ;;  %3550 = vmatprep.subr.bf16.mxu1 %v3813_v1  ;;  %v3624_v20 = vld [vmem:[%s3876_s27 + $0x1c0] ss:$8 sps:$4 sm:$0xff]   ;;  %v3631_v23 = vld [vmem:[%s3876_s27 + $0x10] ss:$8 sps:$4 sm:$0xff]   ;;  %v3633_v25 = vld [vmem:[%s3876_s27 + $0x24] ss:$8 sps:$4 sm:$0xff]  }
  0x14   : > { %v3632_v24 = vld [vmem:[%s3876_s27 + $0x1d0] ss:$8 sps:$4 sm:$0xff]   ;;  %v3635_v26 = vld [vmem:[%s3876_s27 + $0x1e4] ss:$8 sps:$4 sm:$0xff]   ;;  %v3637_v27 = vld [vmem:[%s3876_s27 + $0x20] ss:$8 sps:$4 sm:$0xff]  }
  0x15   : > { %v3638_v28 = vld [vmem:[%s3876_s27 + $0x1e0] ss:$8 sps:$4 sm:$0xff]   ;;  %v3639_v29 = vld [vmem:[%s3876_s27 + $0x34] ss:$8 sps:$4 sm:$0xff]   ;;  %v3643_v31 = vld [vmem:[%s3876_s27 + $0x30] ss:$8 sps:$4 sm:$0xff]  }
  0x16   : > { %1260 = vmatpush1.bf16.msra.mxu0 %v3607_v3  ;;  %3566 = vmatpush1.bf16.msra.mxu1 %v3607_v3  ;;  %v3641_v30 = vld [vmem:[%s3876_s27 + $0x1f4] ss:$8 sps:$4 sm:$0xff]   ;;  %v3644_v32 = vld [vmem:[%s3876_s27 + $0x1f0] ss:$8 sps:$4 sm:$0xff]   ;;  %v3645_v33 = vld [vmem:[%s3876_s27 + $0x44] ss:$8 sps:$4 sm:$0xff]  }
  0x17   : > { %1261 = vmatprep.subr.bf16.mxu0 %v3813_v1  ;;  %3551 = vmatprep.subr.bf16.mxu1 %v3813_v1  ;;  %v3647_v34 = vld [vmem:[%s3876_s27 + $0x204] ss:$8 sps:$4 sm:$0xff]   ;;  %v3649_v35 = vld [vmem:[%s3876_s27 + $0x40] ss:$8 sps:$4 sm:$0xff]   ;;  %v3651_v37 = vld [vmem:[%s3876_s27 + $0x54] ss:$8 sps:$4 sm:$0xff]  }
  0x18   : > { %v3650_v36 = vld [vmem:[%s3876_s27 + $0x200] ss:$8 sps:$4 sm:$0xff]   ;;  %v3653_v38 = vld [vmem:[%s3876_s27 + $0x214] ss:$8 sps:$4 sm:$0xff]   ;;  %v3655_v39 = vld [vmem:[%s3876_s27 + $0x50] ss:$8 sps:$4 sm:$0xff]  }
  0x19   : > { %v3656_v40 = vld [vmem:[%s3876_s27 + $0x210] ss:$8 sps:$4 sm:$0xff]   ;;  %v3657_v41 = vld [vmem:[%s3876_s27 + $0x64] ss:$8 sps:$4 sm:$0xff]   ;;  %v3661_v43 = vld [vmem:[%s3876_s27 + $0x60] ss:$8 sps:$4 sm:$0xff]  }
  0x1a   : > { %1262 = vmatpush1.bf16.msra.mxu0 %v3608_v4  ;;  %3567 = vmatpush1.bf16.msra.mxu1 %v3608_v4  ;;  %v3659_v42 = vld [vmem:[%s3876_s27 + $0x224] ss:$8 sps:$4 sm:$0xff]   ;;  %v3662_v44 = vld [vmem:[%s3876_s27 + $0x220] ss:$8 sps:$4 sm:$0xff]   ;;  %v3663_v45 = vld [vmem:[%s3876_s27 + $0x74] ss:$8 sps:$4 sm:$0xff]  }
  0x1b   : > { %1263 = vmatprep.subr.bf16.mxu0 %v3813_v1  ;;  %3552 = vmatprep.subr.bf16.mxu1 %v3813_v1  ;;  %v3665_v46 = vld [vmem:[%s3876_s27 + $0x234] ss:$8 sps:$4 sm:$0xff]   ;;  %v3667_v47 = vld [vmem:[%s3876_s27 + $0x70] ss:$8 sps:$4 sm:$0xff]   ;;  %v3669_v49 = vld [vmem:[%s3876_s27 + $0x84] ss:$8 sps:$4 sm:$0xff]  }
  0x1c   : > { %v3668_v48 = vld [vmem:[%s3876_s27 + $0x230] ss:$8 sps:$4 sm:$0xff]   ;;  %v3671_v50 = vld [vmem:[%s3876_s27 + $0x244] ss:$8 sps:$4 sm:$0xff]   ;;  %v3673_v51 = vld [vmem:[%s3876_s27 + $0x80] ss:$8 sps:$4 sm:$0xff]  }
  0x1d   : > { %v3674_v52 = vld [vmem:[%s3876_s27 + $0x240] ss:$8 sps:$4 sm:$0xff]   ;;  %v3675_v53 = vld [vmem:[%s3876_s27 + $0x94] ss:$8 sps:$4 sm:$0xff]   ;;  %v3679_v55 = vld [vmem:[%s3876_s27 + $0x90] ss:$8 sps:$4 sm:$0xff]  }
  0x1e   : > { %1264 = vmatpush1.bf16.msra.mxu0 %v3609_v5  ;;  %3568 = vmatpush1.bf16.msra.mxu1 %v3609_v5  ;;  %v3677_v54 = vld [vmem:[%s3876_s27 + $0x254] ss:$8 sps:$4 sm:$0xff]   ;;  %v3680_v56 = vld [vmem:[%s3876_s27 + $0x250] ss:$8 sps:$4 sm:$0xff]   ;;  %v3681_v57 = vld [vmem:[%s3876_s27 + $0xa4] ss:$8 sps:$4 sm:$0xff]  }
  0x1f   : > { %1265 = vmatprep.subr.bf16.mxu0 %v3813_v1  ;;  %3553 = vmatprep.subr.bf16.mxu1 %v3813_v1  ;;  %v3683_v58 = vld [vmem:[%s3876_s27 + $0x264] ss:$8 sps:$4 sm:$0xff]   ;;  %v3685_v59 = vld [vmem:[%s3876_s27 + $0xa0] ss:$8 sps:$4 sm:$0xff]   ;;  %v3687_v61 = vld [vmem:[%s3876_s27 + $0xb4] ss:$8 sps:$4 sm:$0xff]  }
  0x20   : > { %v3686_v60 = vld [vmem:[%s3876_s27 + $0x260] ss:$8 sps:$4 sm:$0xff]   ;;  %v3689_v62 = vld [vmem:[%s3876_s27 + $0x274] ss:$8 sps:$4 sm:$0xff]   ;;  %v3691_v63 = vld [vmem:[%s3876_s27 + $0xb0] ss:$8 sps:$4 sm:$0xff]  }
  0x21   : > { %v3692_v0 = vld [vmem:[%s3876_s27 + $0x270] ss:$8 sps:$4 sm:$0xff]   ;;  %v3695_v2 = vld [vmem:[%s3876_s27 + $0x284] ss:$8 sps:$4 sm:$0xff]   ;;  %v3697_v3 = vld [vmem:[%s3876_s27 + $0xc0] ss:$8 sps:$4 sm:$0xff]  }
  0x22   : > { %1266 = vmatpush1.bf16.msra.mxu0 %v3610_v7  ;;  %3569 = vmatpush1.bf16.msra.mxu1 %v3610_v7  ;;  %v3698_v4 = vld [vmem:[%s3876_s27 + $0x280] ss:$8 sps:$4 sm:$0xff]   ;;  %v3699_v5 = vld [vmem:[%s3876_s27 + $0xd4] ss:$8 sps:$4 sm:$0xff]   ;;  %v3703_v7 = vld [vmem:[%s3876_s27 + $0xd0] ss:$8 sps:$4 sm:$0xff]  }
  0x23   : > { %1267 = vmatprep.subr.bf16.mxu0 %v3813_v1  ;;  %3554 = vmatprep.subr.bf16.mxu1 %v3813_v1  ;;  %v3701_v6 = vld [vmem:[%s3876_s27 + $0x294] ss:$8 sps:$4 sm:$0xff]   ;;  %v3704_v8 = vld [vmem:[%s3876_s27 + $0x290] ss:$8 sps:$4 sm:$0xff]  }
  0x26   : > { %1268 = vmatpush1.bf16.msra.mxu0 %v3611_v9  ;;  %3570 = vmatpush1.bf16.msra.mxu1 %v3611_v9  ;;  %v3705_v9 = vld [vmem:[%s3876_s27 + $0xe4] ss:$8 sps:$4 sm:$0xff]  }
  0x27   : > { %1269 = vmatprep.subr.bf16.mxu0 %v3813_v1  ;;  %3555 = vmatprep.subr.bf16.mxu1 %v3813_v1 }
  0x2a   : > { %1270 = vmatpush1.bf16.msra.mxu0 %v3612_v10  ;;  %3571 = vmatpush1.bf16.msra.mxu1 %v3612_v10  ;;  %v3707_v10 = vld [vmem:[%s3876_s27 + $0x2a4] ss:$8 sps:$4 sm:$0xff]  }
  0x2b   : > { %1271 = vmatprep.subr.bf16.mxu0 %v3813_v1  ;;  %3556 = vmatprep.subr.bf16.mxu1 %v3813_v1 }
  0x2e   : > { %1272 = vmatpush2.bf16.msra.mxu0 %v3613_v11  ;;  %3572 = vmatpush2.bf16.msra.mxu1 %v3613_v11  ;;  %v3709_v11 = vld [vmem:[%s3876_s27 + $0xe0] ss:$8 sps:$4 sm:$0xff]  }
  0x2f   : > { %1273 = vmatprep.subr.bf16.mxu0 %v3813_v1  ;;  %3557 = vmatprep.subr.bf16.mxu1 %v3813_v1 }
  0x32   : > { %1274 = vmatpush2.bf16.msra.mxu0 %v3614_v12  ;;  %3573 = vmatpush2.bf16.msra.mxu1 %v3614_v12  ;;  %v3710_v12 = vld [vmem:[%s3876_s27 + $0x2a0] ss:$8 sps:$4 sm:$0xff]  }
  0x33   : > { %1275 = vmatprep.subr.bf16.mxu0 %v3813_v1  ;;  %3558 = vmatprep.subr.bf16.mxu1 %v3813_v1 }
  0x36   : > { %1276 = vmatpush2.bf16.msra.mxu0 %v3615_v13  ;;  %3574 = vmatpush2.bf16.msra.mxu1 %v3615_v13  ;;  %v3711_v13 = vld [vmem:[%s3876_s27 + $0xf4] ss:$8 sps:$4 sm:$0xff]  }
  0x37   : > { %1277 = vmatprep.subr.bf16.mxu0 %v3813_v1  ;;  %3559 = vmatprep.subr.bf16.mxu1 %v3813_v1 }
  0x3a   : > { %1278 = vmatpush2.bf16.msra.mxu0 %v3616_v14  ;;  %3575 = vmatpush2.bf16.msra.mxu1 %v3616_v14  ;;  %v3713_v14 = vld [vmem:[%s3876_s27 + $0x2b4] ss:$8 sps:$4 sm:$0xff]  }
  0x3b   : > { %1279 = vmatprep.subr.bf16.mxu0 %v3813_v1  ;;  %3560 = vmatprep.subr.bf16.mxu1 %v3813_v1 }
  0x3e   : > { %1280 = vmatpush2.bf16.msra.mxu0 %v3617_v15  ;;  %3576 = vmatpush2.bf16.msra.mxu1 %v3617_v15  ;;  %v3715_v15 = vld [vmem:[%s3876_s27 + $0xf0] ss:$8 sps:$4 sm:$0xff]  }
  0x3f   : > { %1281 = vmatprep.subr.bf16.mxu0 %v3813_v1  ;;  %3561 = vmatprep.subr.bf16.mxu1 %v3813_v1 }
  0x42   : > { %1282 = vmatpush2.bf16.msra.mxu0 %v3618_v16  ;;  %3577 = vmatpush2.bf16.msra.mxu1 %v3618_v16  ;;  %v3716_v16 = vld [vmem:[%s3876_s27 + $0x2b0] ss:$8 sps:$4 sm:$0xff]  }
  0x43   : > { %1283 = vmatprep.subr.bf16.mxu0 %v3813_v1  ;;  %3562 = vmatprep.subr.bf16.mxu1 %v3813_v1 }
  0x46   : > { %1284 = vmatpush2.bf16.msra.mxu0 %v3619_v17  ;;  %3578 = vmatpush2.bf16.msra.mxu1 %v3619_v17  ;;  %v3717_v17 = vld [vmem:[%s3876_s27 + $0x104] ss:$8 sps:$4 sm:$0xff]  }
  0x47   : > { %1285 = vmatprep.subr.bf16.mxu0 %v3813_v1  ;;  %3563 = vmatprep.subr.bf16.mxu1 %v3813_v1  ;;  %v3693_v1 = vld [vmem:[%s3876_s27 + $0xc4] ss:$8 sps:$4 sm:$0xff]  }
  0x4a   : > { %1286 = vmatpush2.bf16.msra.mxu0 %v3620_v18  ;;  %3579 = vmatpush2.bf16.msra.mxu1 %v3620_v18  ;;  %v3719_v18 = vld [vmem:[%s3876_s27 + $0x2c4] ss:$8 sps:$4 sm:$0xff]  }
  0x4d   : > { %1288 = vmatmul.mubr.bf16.vlgmr.msra.gmra.mxu0 %v3621_v19  ;;  %1512 = vmatmul.mubr.bf16.vlgmr.msra.gmra.mxu1 %v3624_v20  ;;  %v3721_v19 = vld [vmem:[%s3876_s27 + $0x100] ss:$8 sps:$4 sm:$0xff]  }
  0x4e   : > { %1295 = vmatprep.mubr.bf16.mxu0 %v3627_v21  ;;  %1519 = vmatprep.mubr.bf16.mxu1 %v3629_v22  ;;  %v3722_v20 = vld [vmem:[%s3876_s27 + $0x2c0] ss:$8 sps:$4 sm:$0xff]   ;;  %v3723_v21 = vld [vmem:[%s3876_s27 + $0x114] ss:$8 sps:$4 sm:$0xff]  }
  0x4f   : > { %v3725_v22 = vld [vmem:[%s3876_s27 + $0x2d4] ss:$8 sps:$4 sm:$0xff]  }
  0x55   : > { %1296 = vmatmul.mubr.bf16.gmra.mxu0 %v3631_v23  ;;  %1520 = vmatmul.mubr.bf16.gmra.mxu1 %v3632_v24  ;;  %v3727_v23 = vld [vmem:[%s3876_s27 + $0x110] ss:$8 sps:$4 sm:$0xff]  }
  0x56   : > { %1303 = vmatprep.mubr.bf16.mxu0 %v3633_v25  ;;  %1527 = vmatprep.mubr.bf16.mxu1 %v3635_v26  ;;  %v3728_v24 = vld [vmem:[%s3876_s27 + $0x2d0] ss:$8 sps:$4 sm:$0xff]   ;;  %v3729_v25 = vld [vmem:[%s3876_s27 + $0x124] ss:$8 sps:$4 sm:$0xff]  }
  0x57   : > { %v3731_v26 = vld [vmem:[%s3876_s27 + $0x2e4] ss:$8 sps:$4 sm:$0xff]  }
  0x5d   : > { %1304 = vmatmul.mubr.bf16.gmra.mxu0 %v3637_v27  ;;  %1528 = vmatmul.mubr.bf16.gmra.mxu1 %v3638_v28  ;;  %v3733_v27 = vld [vmem:[%s3876_s27 + $0x120] ss:$8 sps:$4 sm:$0xff]  }
  0x5e   : > { %1311 = vmatprep.mubr.bf16.mxu0 %v3639_v29  ;;  %1535 = vmatprep.mubr.bf16.mxu1 %v3641_v30  ;;  %v3734_v28 = vld [vmem:[%s3876_s27 + $0x2e0] ss:$8 sps:$4 sm:$0xff]   ;;  %v3735_v29 = vld [vmem:[%s3876_s27 + $0x134] ss:$8 sps:$4 sm:$0xff]  }
  0x5f   : > { %v3737_v30 = vld [vmem:[%s3876_s27 + $0x2f4] ss:$8 sps:$4 sm:$0xff]  }
  0x65   : > { %1312 = vmatmul.mubr.bf16.gmra.mxu0 %v3643_v31  ;;  %1536 = vmatmul.mubr.bf16.gmra.mxu1 %v3644_v32  ;;  %v3739_v31 = vld [vmem:[%s3876_s27 + $0x130] ss:$8 sps:$4 sm:$0xff]  }
  0x66   : > { %1319 = vmatprep.mubr.bf16.mxu0 %v3645_v33  ;;  %1543 = vmatprep.mubr.bf16.mxu1 %v3647_v34  ;;  %v3740_v32 = vld [vmem:[%s3876_s27 + $0x2f0] ss:$8 sps:$4 sm:$0xff]   ;;  %v3741_v33 = vld [vmem:[%s3876_s27 + $0x144] ss:$8 sps:$4 sm:$0xff]  }
  0x67   : > { %v3743_v34 = vld [vmem:[%s3876_s27 + $0x304] ss:$8 sps:$4 sm:$0xff]  }
  0x6d   : > { %1320 = vmatmul.mubr.bf16.gmra.mxu0 %v3649_v35  ;;  %1544 = vmatmul.mubr.bf16.gmra.mxu1 %v3650_v36  ;;  %v3745_v35 = vld [vmem:[%s3876_s27 + $0x140] ss:$8 sps:$4 sm:$0xff]  }
  0x6e   : > { %1327 = vmatprep.mubr.bf16.mxu0 %v3651_v37  ;;  %1551 = vmatprep.mubr.bf16.mxu1 %v3653_v38  ;;  %v3746_v36 = vld [vmem:[%s3876_s27 + $0x300] ss:$8 sps:$4 sm:$0xff]   ;;  %v3747_v37 = vld [vmem:[%s3876_s27 + $0x154] ss:$8 sps:$4 sm:$0xff]  }
  0x6f   : > { %v3749_v38 = vld [vmem:[%s3876_s27 + $0x314] ss:$8 sps:$4 sm:$0xff]  }
  0x75   : > { %1328 = vmatmul.mubr.bf16.gmra.mxu0 %v3655_v39  ;;  %1552 = vmatmul.mubr.bf16.gmra.mxu1 %v3656_v40  ;;  %v3751_v39 = vld [vmem:[%s3876_s27 + $0x150] ss:$8 sps:$4 sm:$0xff]  }
  0x76   : > { %1335 = vmatprep.mubr.bf16.mxu0 %v3657_v41  ;;  %1559 = vmatprep.mubr.bf16.mxu1 %v3659_v42  ;;  %v3752_v40 = vld [vmem:[%s3876_s27 + $0x310] ss:$8 sps:$4 sm:$0xff]   ;;  %v3753_v41 = vld [vmem:[%s3876_s27 + $0x164] ss:$8 sps:$4 sm:$0xff]  }
  0x77   : > { %v3755_v42 = vld [vmem:[%s3876_s27 + $0x324] ss:$8 sps:$4 sm:$0xff]  }
  0x7d   : > { %1336 = vmatmul.mubr.bf16.gmra.mxu0 %v3661_v43  ;;  %1560 = vmatmul.mubr.bf16.gmra.mxu1 %v3662_v44  ;;  %v3757_v43 = vld [vmem:[%s3876_s27 + $0x160] ss:$8 sps:$4 sm:$0xff]  }
  0x7e   : > { %1343 = vmatprep.mubr.bf16.mxu0 %v3663_v45  ;;  %1567 = vmatprep.mubr.bf16.mxu1 %v3665_v46  ;;  %v3758_v44 = vld [vmem:[%s3876_s27 + $0x320] ss:$8 sps:$4 sm:$0xff]   ;;  %v3759_v45 = vld [vmem:[%s3876_s27 + $0x174] ss:$8 sps:$4 sm:$0xff]  }
  0x7f   : > { %v3761_v46 = vld [vmem:[%s3876_s27 + $0x334] ss:$8 sps:$4 sm:$0xff]  }
  0x85   : > { %1344 = vmatmul.mubr.bf16.gmra.mxu0 %v3667_v47  ;;  %1568 = vmatmul.mubr.bf16.gmra.mxu1 %v3668_v48  ;;  %v3763_v47 = vld [vmem:[%s3876_s27 + $0x170] ss:$8 sps:$4 sm:$0xff]  }
  0x86   : > { %1351 = vmatprep.mubr.bf16.mxu0 %v3669_v49  ;;  %1575 = vmatprep.mubr.bf16.mxu1 %v3671_v50  ;;  %v3764_v48 = vld [vmem:[%s3876_s27 + $0x330] ss:$8 sps:$4 sm:$0xff]   ;;  %v3765_v49 = vld [vmem:[%s3876_s27 + $0x184] ss:$8 sps:$4 sm:$0xff]  }
  0x87   : > { %v3767_v50 = vld [vmem:[%s3876_s27 + $0x344] ss:$8 sps:$4 sm:$0xff]  }
  0x8d   : > { %1352 = vmatmul.mubr.bf16.gmra.mxu0 %v3673_v51  ;;  %1576 = vmatmul.mubr.bf16.gmra.mxu1 %v3674_v52  ;;  %v3769_v51 = vld [vmem:[%s3876_s27 + $0x180] ss:$8 sps:$4 sm:$0xff]  }
  0x8e   : > { %1359 = vmatprep.mubr.bf16.mxu0 %v3675_v53  ;;  %1583 = vmatprep.mubr.bf16.mxu1 %v3677_v54  ;;  %v3770_v52 = vld [vmem:[%s3876_s27 + $0x340] ss:$8 sps:$4 sm:$0xff]   ;;  %v3771_v53 = vld [vmem:[%s3876_s27 + $0x194] ss:$8 sps:$4 sm:$0xff]  }
  0x8f   : > { %v3773_v54 = vld [vmem:[%s3876_s27 + $0x354] ss:$8 sps:$4 sm:$0xff]  }
  0x95   : > { %1360 = vmatmul.mubr.bf16.gmra.mxu0 %v3679_v55  ;;  %1584 = vmatmul.mubr.bf16.gmra.mxu1 %v3680_v56 }
  0x96   : > { %1367 = vmatprep.mubr.bf16.mxu0 %v3681_v57  ;;  %1591 = vmatprep.mubr.bf16.mxu1 %v3683_v58 }
  0x9d   : > { %1368 = vmatmul.mubr.bf16.gmra.mxu0 %v3685_v59  ;;  %1592 = vmatmul.mubr.bf16.gmra.mxu1 %v3686_v60 }
  0x9e   : > { %1375 = vmatprep.mubr.bf16.mxu0 %v3687_v61  ;;  %1599 = vmatprep.mubr.bf16.mxu1 %v3689_v62  ;;  %v3775_v61 = vld [vmem:[%s3876_s27 + $0x190] ss:$8 sps:$4 sm:$0xff]  }
  0x9f   : > { %v3776_v62 = vld [vmem:[%s3876_s27 + $0x350] ss:$8 sps:$4 sm:$0xff]  }
  0xa5   : > { %1376 = vmatmul.mubr.bf16.gmra.mxu0 %v3691_v63  ;;  %1600 = vmatmul.mubr.bf16.gmra.mxu1 %v3692_v0  ;;  %v3777_v63 = vld [vmem:[%s3876_s27 + $0x1a4] ss:$8 sps:$4 sm:$0xff]  }
  0xa6   : > { %1383 = vmatprep.mubr.bf16.mxu0 %v3693_v1  ;;  %1607 = vmatprep.mubr.bf16.mxu1 %v3695_v2 }
  0xad   : > { %1384 = vmatmul.mubr.bf16.gmra.mxu0 %v3697_v3  ;;  %1608 = vmatmul.mubr.bf16.gmra.mxu1 %v3698_v4  ;;  %v3779_v4 = vld [vmem:[%s3876_s27 + $0x364] ss:$8 sps:$4 sm:$0xff]  }
  0xae   : > { %1391 = vmatprep.mubr.bf16.mxu0 %v3699_v5  ;;  %1615 = vmatprep.mubr.bf16.mxu1 %v3701_v6 }
  0xb5   : > { %1392 = vmatmul.mubr.bf16.gmra.mxu0 %v3703_v7  ;;  %1616 = vmatmul.mubr.bf16.gmra.mxu1 %v3704_v8 }
  0xb6   : > { %1399 = vmatprep.mubr.bf16.mxu0 %v3705_v9  ;;  %1623 = vmatprep.mubr.bf16.mxu1 %v3707_v10 }
  0xbd   : > { %1400 = vmatmul.mubr.bf16.gmra.mxu0 %v3709_v11  ;;  %1624 = vmatmul.mubr.bf16.gmra.mxu1 %v3710_v12 }
  0xbe   : > { %1407 = vmatprep.mubr.bf16.mxu0 %v3711_v13  ;;  %1631 = vmatprep.mubr.bf16.mxu1 %v3713_v14 }
  0xc5   : > { %1408 = vmatmul.mubr.bf16.gmra.mxu0 %v3715_v15  ;;  %1632 = vmatmul.mubr.bf16.gmra.mxu1 %v3716_v16  ;;  %v3781_v15 = vld [vmem:[%s3876_s27 + $0x1a0] ss:$8 sps:$4 sm:$0xff]  }
  0xc6   : > { %1415 = vmatprep.mubr.bf16.mxu0 %v3717_v17  ;;  %1639 = vmatprep.mubr.bf16.mxu1 %v3719_v18  ;;  %v3782_v16 = vld [vmem:[%s3876_s27 + $0x360] ss:$8 sps:$4 sm:$0xff]   ;;  %v3783_v17 = vld [vmem:[%s3876_s27 + $0x1b4] ss:$8 sps:$4 sm:$0xff]  }
  0xcd   : > { %1416 = vmatmul.mubr.bf16.gmra.mxu0 %v3721_v19  ;;  %1640 = vmatmul.mubr.bf16.gmra.mxu1 %v3722_v20 }
  0xce   : > { %1423 = vmatprep.mubr.bf16.mxu0 %v3723_v21  ;;  %1647 = vmatprep.mubr.bf16.mxu1 %v3725_v22  ;;  %v3785_v22 = vld [vmem:[%s3876_s27 + $0x374] ss:$8 sps:$4 sm:$0xff]  }
  0xd5   : > { %1424 = vmatmul.mubr.bf16.gmra.mxu0 %v3727_v23  ;;  %1648 = vmatmul.mubr.bf16.gmra.mxu1 %v3728_v24 }
  0xd6   : > { %1431 = vmatprep.mubr.bf16.mxu0 %v3729_v25  ;;  %1655 = vmatprep.mubr.bf16.mxu1 %v3731_v26 }
  0xdd   : > { %1432 = vmatmul.mubr.bf16.gmra.mxu0 %v3733_v27  ;;  %1656 = vmatmul.mubr.bf16.gmra.mxu1 %v3734_v28 }
  0xde   : > { %1439 = vmatprep.mubr.bf16.mxu0 %v3735_v29  ;;  %1663 = vmatprep.mubr.bf16.mxu1 %v3737_v30 }
  0xe5   : > { %1440 = vmatmul.mubr.bf16.gmra.mxu0 %v3739_v31  ;;  %1664 = vmatmul.mubr.bf16.gmra.mxu1 %v3740_v32 }
  0xe6   : > { %1447 = vmatprep.mubr.bf16.mxu0 %v3741_v33  ;;  %1671 = vmatprep.mubr.bf16.mxu1 %v3743_v34  ;;  %v3787_v33 = vld [vmem:[%s3876_s27 + $0x1b0] ss:$8 sps:$4 sm:$0xff]  }
  0xe7   : > { %v3788_v34 = vld [vmem:[%s3876_s27 + $0x370] ss:$8 sps:$4 sm:$0xff]  }
  0xed   : > { %1448 = vmatmul.mubr.bf16.gmra.mxu0 %v3745_v35  ;;  %1672 = vmatmul.mubr.bf16.gmra.mxu1 %v3746_v36 }
  0xee   : > { %1455 = vmatprep.mubr.bf16.mxu0 %v3747_v37  ;;  %1679 = vmatprep.mubr.bf16.mxu1 %v3749_v38 }
  0xf5   : > { %1456 = vmatmul.mubr.bf16.gmra.mxu0 %v3751_v39  ;;  %1680 = vmatmul.mubr.bf16.gmra.mxu1 %v3752_v40 }
  0xf6   : > { %1463 = vmatprep.mubr.bf16.mxu0 %v3753_v41  ;;  %1687 = vmatprep.mubr.bf16.mxu1 %v3755_v42 }
  0xfd   : > { %1464 = vmatmul.mubr.bf16.gmra.mxu0 %v3757_v43  ;;  %1688 = vmatmul.mubr.bf16.gmra.mxu1 %v3758_v44 }
  0xfe   : > { %1471 = vmatprep.mubr.bf16.mxu0 %v3759_v45  ;;  %1695 = vmatprep.mubr.bf16.mxu1 %v3761_v46 }
 0x105   : > { %1472 = vmatmul.mubr.bf16.gmra.mxu0 %v3763_v47  ;;  %1696 = vmatmul.mubr.bf16.gmra.mxu1 %v3764_v48 }
 0x106   : > { %1479 = vmatprep.mubr.bf16.mxu0 %v3765_v49  ;;  %1703 = vmatprep.mubr.bf16.mxu1 %v3767_v50 }
 0x10d   : > { %v1289_v55 = vpop.f32.mrf.mxu0  ;;  %1480 = vmatmul.mubr.bf16.gmra.mxu0 %v3769_v51  ;;  %v1513_v56 = vpop.f32.mrf.mxu1  ;;  %1704 = vmatmul.mubr.bf16.gmra.mxu1 %v3770_v52 }
 0x10e   : > { %1487 = vmatprep.mubr.bf16.mxu0 %v3771_v53  ;;  %1711 = vmatprep.mubr.bf16.mxu1 %v3773_v54  ;;  %v2075_v0 = vmax.f32 %v1289_v55, 0.0  ;;  %v2131_v1 = vmax.f32 %v1513_v56, 0.0 }
 0x10f   : > { %v1291_v57 = vpop.f32.mrf.mxu0  ;;  %v1515_v58 = vpop.f32.mrf.mxu1 }
 0x111   : > { %v1292_v59 = vpop.f32.mrf.mxu0  ;;  %v1516_v60 = vpop.f32.mrf.mxu1 }
 0x112   : > { %v2076_v2 = vmax.f32 %v1292_v59, 0.0  ;;  %v2132_v3 = vmax.f32 %v1516_v60, 0.0 }
 0x113   : > { %v1294_v5 = vpop.f32.mrf.mxu0  ;;  %v1518_v6 = vpop.f32.mrf.mxu1 }
 0x114   : > { %v3216_v7 = vpack.c.bf16 %v2076_v2, %v2075_v0  ;;  %v3356_v8 = vpack.c.bf16 %v2132_v3, %v2131_v1 }
 0x115   : > { %v1297_v9 = vpop.f32.mrf.mxu0  ;;  %1488 = vmatmul.mubr.bf16.gmra.mxu0 %v3775_v61  ;;  %v1521_v10 = vpop.f32.mrf.mxu1  ;;  %1712 = vmatmul.mubr.bf16.gmra.mxu1 %v3776_v62 }
 0x116   : > { %3217 = vst [vmem:[%s4045_s30] sm:$0xff] %v3216_v7   ;;  %3520 = vst [vmem:[%s4045_s30 + $0xe0] sm:$0xff] %v3356_v8   ;;  %1495 = vmatprep.mubr.bf16.mxu0 %v3777_v63  ;;  %1719 = vmatprep.mubr.bf16.mxu1 %v3779_v4  ;;  %v2077_v18 = vmax.f32 %v1297_v9, 0.0  ;;  %v2133_v19 = vmax.f32 %v1521_v10, 0.0 }
 0x117   : > { %v1299_v11 = vpop.f32.mrf.mxu0  ;;  %v1523_v12 = vpop.f32.mrf.mxu1 }
 0x119   : > { %v1300_v13 = vpop.f32.mrf.mxu0  ;;  %v1524_v14 = vpop.f32.mrf.mxu1 }
 0x11a   : > { %v2078_v20 = vmax.f32 %v1300_v13, 0.0  ;;  %v2134_v21 = vmax.f32 %v1524_v14, 0.0 }
 0x11b   : > { %v1302_v23 = vpop.f32.mrf.mxu0  ;;  %v1526_v24 = vpop.f32.mrf.mxu1 }
 0x11c   : > { %v3221_v25 = vpack.c.bf16 %v2078_v20, %v2077_v18  ;;  %v3361_v26 = vpack.c.bf16 %v2134_v21, %v2133_v19 }
 0x11d   : > { %v1305_v27 = vpop.f32.mrf.mxu0  ;;  %1496 = vmatmul.mubr.bf16.gmra.mxu0 %v3781_v15  ;;  %v1529_v28 = vpop.f32.mrf.mxu1  ;;  %1720 = vmatmul.mubr.bf16.gmra.mxu1 %v3782_v16 }
 0x11e   : > { %3493 = vst [vmem:[%s4045_s30 + $0x8] sm:$0xff] %v3221_v25   ;;  %3521 = vst [vmem:[%s4045_s30 + $0xe8] sm:$0xff] %v3361_v26   ;;  %1503 = vmatprep.mubr.bf16.mxu0 %v3783_v17  ;;  %1727 = vmatprep.mubr.bf16.mxu1 %v3785_v22  ;;  %v2079_v35 = vmax.f32 %v1305_v27, 0.0  ;;  %v2135_v36 = vmax.f32 %v1529_v28, 0.0 }
 0x11f   : > { %v1307_v29 = vpop.f32.mrf.mxu0  ;;  %v1531_v30 = vpop.f32.mrf.mxu1 }
 0x121   : > { %v1308_v31 = vpop.f32.mrf.mxu0  ;;  %v1532_v32 = vpop.f32.mrf.mxu1 }
 0x122   : > { %v2080_v37 = vmax.f32 %v1308_v31, 0.0  ;;  %v2136_v38 = vmax.f32 %v1532_v32, 0.0 }
 0x123   : > { %v1310_v39 = vpop.f32.mrf.mxu0  ;;  %v1534_v40 = vpop.f32.mrf.mxu1 }
 0x124   : > { %v3226_v41 = vpack.c.bf16 %v2080_v37, %v2079_v35  ;;  %v3366_v42 = vpack.c.bf16 %v2136_v38, %v2135_v36 }
 0x125   : > { %v1313_v43 = vpop.f32.mrf.mxu0  ;;  %1504 = vmatmul.mubr.bf16.gmra.mxu0 %v3787_v33  ;;  %v1537_v44 = vpop.f32.mrf.mxu1  ;;  %1728 = vmatmul.mubr.bf16.gmra.mxu1 %v3788_v34 }
 0x126   : > { %3494 = vst [vmem:[%s4045_s30 + $0x10] sm:$0xff] %v3226_v41   ;;  %3522 = vst [vmem:[%s4045_s30 + $0xf0] sm:$0xff] %v3366_v42   ;;  %v2081_v49 = vmax.f32 %v1313_v43, 0.0  ;;  %v2137_v50 = vmax.f32 %v1537_v44, 0.0 }
 0x127   : > { %v1315_v45 = vpop.f32.mrf.mxu0  ;;  %v1539_v46 = vpop.f32.mrf.mxu1 }
 0x129   : > { %v1316_v47 = vpop.f32.mrf.mxu0  ;;  %v1540_v48 = vpop.f32.mrf.mxu1 }
 0x12a   : > { %v2082_v51 = vmax.f32 %v1316_v47, 0.0  ;;  %v2138_v52 = vmax.f32 %v1540_v48, 0.0 }
 0x12b   : > { %v1318_v53 = vpop.f32.mrf.mxu0  ;;  %v1542_v54 = vpop.f32.mrf.mxu1 }
 0x12c   : > { %v3231_v55 = vpack.c.bf16 %v2082_v51, %v2081_v49  ;;  %v3371_v56 = vpack.c.bf16 %v2138_v52, %v2137_v50 }
 0x12d   : > { %v1321_v57 = vpop.f32.mrf.mxu0  ;;  %v1545_v58 = vpop.f32.mrf.mxu1 }
 0x12e   : > { %3495 = vst [vmem:[%s4045_s30 + $0x18] sm:$0xff] %v3231_v55   ;;  %3523 = vst [vmem:[%s4045_s30 + $0xf8] sm:$0xff] %v3371_v56   ;;  %v2083_v63 = vmax.f32 %v1321_v57, 0.0  ;;  %v2139_v0 = vmax.f32 %v1545_v58, 0.0 }
 0x12f   : > { %v1323_v59 = vpop.f32.mrf.mxu0  ;;  %v1547_v60 = vpop.f32.mrf.mxu1 }
 0x131   : > { %v1324_v61 = vpop.f32.mrf.mxu0  ;;  %v1548_v62 = vpop.f32.mrf.mxu1 }
 0x132   : > { %v2084_v1 = vmax.f32 %v1324_v61, 0.0  ;;  %v2140_v2 = vmax.f32 %v1548_v62, 0.0 }
 0x133   : > { %v1326_v3 = vpop.f32.mrf.mxu0  ;;  %v1550_v4 = vpop.f32.mrf.mxu1 }
 0x134   : > { %v3236_v5 = vpack.c.bf16 %v2084_v1, %v2083_v63  ;;  %v3376_v6 = vpack.c.bf16 %v2140_v2, %v2139_v0 }
 0x135   : > { %v1329_v7 = vpop.f32.mrf.mxu0  ;;  %v1553_v8 = vpop.f32.mrf.mxu1 }
 0x136   : > { %3496 = vst [vmem:[%s4045_s30 + $0x20] sm:$0xff] %v3236_v5   ;;  %3524 = vst [vmem:[%s4045_s30 + $0x100] sm:$0xff] %v3376_v6   ;;  %v2085_v13 = vmax.f32 %v1329_v7, 0.0  ;;  %v2141_v14 = vmax.f32 %v1553_v8, 0.0 }
 0x137   : > { %v1331_v9 = vpop.f32.mrf.mxu0  ;;  %v1555_v10 = vpop.f32.mrf.mxu1 }
 0x139   : > { %v1332_v11 = vpop.f32.mrf.mxu0  ;;  %v1556_v12 = vpop.f32.mrf.mxu1 }
 0x13a   : > { %v2086_v15 = vmax.f32 %v1332_v11, 0.0  ;;  %v2142_v16 = vmax.f32 %v1556_v12, 0.0 }
 0x13b   : > { %v1334_v17 = vpop.f32.mrf.mxu0  ;;  %v1558_v18 = vpop.f32.mrf.mxu1 }
 0x13c   : > { %v3241_v19 = vpack.c.bf16 %v2086_v15, %v2085_v13  ;;  %v3381_v20 = vpack.c.bf16 %v2142_v16, %v2141_v14 }
 0x13d   : > { %v1337_v21 = vpop.f32.mrf.mxu0  ;;  %v1561_v22 = vpop.f32.mrf.mxu1 }
 0x13e   : > { %3497 = vst [vmem:[%s4045_s30 + $0x28] sm:$0xff] %v3241_v19   ;;  %3525 = vst [vmem:[%s4045_s30 + $0x108] sm:$0xff] %v3381_v20   ;;  %v2087_v27 = vmax.f32 %v1337_v21, 0.0  ;;  %v2143_v28 = vmax.f32 %v1561_v22, 0.0 }
 0x13f   : > { %v1339_v23 = vpop.f32.mrf.mxu0  ;;  %v1563_v24 = vpop.f32.mrf.mxu1 }
 0x141   : > { %v1340_v25 = vpop.f32.mrf.mxu0  ;;  %v1564_v26 = vpop.f32.mrf.mxu1 }
 0x142   : > { %v2088_v29 = vmax.f32 %v1340_v25, 0.0  ;;  %v2144_v30 = vmax.f32 %v1564_v26, 0.0 }
 0x143   : > { %v1342_v31 = vpop.f32.mrf.mxu0  ;;  %v1566_v32 = vpop.f32.mrf.mxu1 }
 0x144   : > { %v3246_v33 = vpack.c.bf16 %v2088_v29, %v2087_v27  ;;  %v3386_v34 = vpack.c.bf16 %v2144_v30, %v2143_v28 }
 0x145   : > { %v1345_v35 = vpop.f32.mrf.mxu0  ;;  %v1569_v36 = vpop.f32.mrf.mxu1 }
 0x146   : > { %3498 = vst [vmem:[%s4045_s30 + $0x30] sm:$0xff] %v3246_v33   ;;  %3526 = vst [vmem:[%s4045_s30 + $0x110] sm:$0xff] %v3386_v34   ;;  %v2089_v41 = vmax.f32 %v1345_v35, 0.0  ;;  %v2145_v42 = vmax.f32 %v1569_v36, 0.0 }
 0x147   : > { %v1347_v37 = vpop.f32.mrf.mxu0  ;;  %v1571_v38 = vpop.f32.mrf.mxu1 }
 0x149   : > { %v1348_v39 = vpop.f32.mrf.mxu0  ;;  %v1572_v40 = vpop.f32.mrf.mxu1 }
 0x14a   : > { %v2090_v43 = vmax.f32 %v1348_v39, 0.0  ;;  %v2146_v44 = vmax.f32 %v1572_v40, 0.0 }
 0x14b   : > { %v1350_v45 = vpop.f32.mrf.mxu0  ;;  %v1574_v46 = vpop.f32.mrf.mxu1 }
 0x14c   : > { %v3251_v47 = vpack.c.bf16 %v2090_v43, %v2089_v41  ;;  %v3391_v48 = vpack.c.bf16 %v2146_v44, %v2145_v42 }
 0x14d   : > { %v1353_v49 = vpop.f32.mrf.mxu0  ;;  %v1577_v50 = vpop.f32.mrf.mxu1 }
 0x14e   : > { %3499 = vst [vmem:[%s4045_s30 + $0x38] sm:$0xff] %v3251_v47   ;;  %3527 = vst [vmem:[%s4045_s30 + $0x118] sm:$0xff] %v3391_v48   ;;  %v2091_v55 = vmax.f32 %v1353_v49, 0.0  ;;  %v2147_v56 = vmax.f32 %v1577_v50, 0.0 }
 0x14f   : > { %v1355_v51 = vpop.f32.mrf.mxu0  ;;  %v1579_v52 = vpop.f32.mrf.mxu1 }
 0x151   : > { %v1356_v53 = vpop.f32.mrf.mxu0  ;;  %v1580_v54 = vpop.f32.mrf.mxu1 }
 0x152   : > { %v2092_v57 = vmax.f32 %v1356_v53, 0.0  ;;  %v2148_v58 = vmax.f32 %v1580_v54, 0.0 }
 0x153   : > { %v1358_v59 = vpop.f32.mrf.mxu0  ;;  %v1582_v60 = vpop.f32.mrf.mxu1 }
 0x154   : > { %v3256_v61 = vpack.c.bf16 %v2092_v57, %v2091_v55  ;;  %v3396_v62 = vpack.c.bf16 %v2148_v58, %v2147_v56 }
 0x155   : > { %v1361_v63 = vpop.f32.mrf.mxu0  ;;  %v1585_v0 = vpop.f32.mrf.mxu1 }
 0x156   : > { %3500 = vst [vmem:[%s4045_s30 + $0x40] sm:$0xff] %v3256_v61   ;;  %3528 = vst [vmem:[%s4045_s30 + $0x120] sm:$0xff] %v3396_v62   ;;  %v2093_v5 = vmax.f32 %v1361_v63, 0.0  ;;  %v2149_v6 = vmax.f32 %v1585_v0, 0.0 }
 0x157   : > { %v1363_v1 = vpop.f32.mrf.mxu0  ;;  %v1587_v2 = vpop.f32.mrf.mxu1 }
 0x159   : > { %v1364_v3 = vpop.f32.mrf.mxu0  ;;  %v1588_v4 = vpop.f32.mrf.mxu1 }
 0x15a   : > { %v2094_v7 = vmax.f32 %v1364_v3, 0.0  ;;  %v2150_v8 = vmax.f32 %v1588_v4, 0.0 }
 0x15b   : > { %v1366_v9 = vpop.f32.mrf.mxu0  ;;  %v1590_v10 = vpop.f32.mrf.mxu1 }
 0x15c   : > { %v3261_v11 = vpack.c.bf16 %v2094_v7, %v2093_v5  ;;  %v3401_v12 = vpack.c.bf16 %v2150_v8, %v2149_v6 }
 0x15d   : > { %v1369_v13 = vpop.f32.mrf.mxu0  ;;  %v1593_v14 = vpop.f32.mrf.mxu1 }
 0x15e   : > { %3501 = vst [vmem:[%s4045_s30 + $0x48] sm:$0xff] %v3261_v11   ;;  %3529 = vst [vmem:[%s4045_s30 + $0x128] sm:$0xff] %v3401_v12   ;;  %v2095_v19 = vmax.f32 %v1369_v13, 0.0  ;;  %v2151_v20 = vmax.f32 %v1593_v14, 0.0 }
 0x15f   : > { %v1371_v15 = vpop.f32.mrf.mxu0  ;;  %v1595_v16 = vpop.f32.mrf.mxu1 }
 0x161   : > { %v1372_v17 = vpop.f32.mrf.mxu0  ;;  %v1596_v18 = vpop.f32.mrf.mxu1 }
 0x162   : > { %v2096_v21 = vmax.f32 %v1372_v17, 0.0  ;;  %v2152_v22 = vmax.f32 %v1596_v18, 0.0 }
 0x163   : > { %v1374_v23 = vpop.f32.mrf.mxu0  ;;  %v1598_v24 = vpop.f32.mrf.mxu1 }
 0x164   : > { %v3266_v25 = vpack.c.bf16 %v2096_v21, %v2095_v19  ;;  %v3406_v26 = vpack.c.bf16 %v2152_v22, %v2151_v20 }
 0x165   : > { %v1377_v27 = vpop.f32.mrf.mxu0  ;;  %v1601_v28 = vpop.f32.mrf.mxu1 }
 0x166   : > { %3502 = vst [vmem:[%s4045_s30 + $0x50] sm:$0xff] %v3266_v25   ;;  %3530 = vst [vmem:[%s4045_s30 + $0x130] sm:$0xff] %v3406_v26   ;;  %v2097_v33 = vmax.f32 %v1377_v27, 0.0  ;;  %v2153_v34 = vmax.f32 %v1601_v28, 0.0 }
 0x167   : > { %v1379_v29 = vpop.f32.mrf.mxu0  ;;  %v1603_v30 = vpop.f32.mrf.mxu1 }
 0x169   : > { %v1380_v31 = vpop.f32.mrf.mxu0  ;;  %v1604_v32 = vpop.f32.mrf.mxu1 }
 0x16a   : > { %v2098_v35 = vmax.f32 %v1380_v31, 0.0  ;;  %v2154_v36 = vmax.f32 %v1604_v32, 0.0 }
 0x16b   : > { %v1382_v37 = vpop.f32.mrf.mxu0  ;;  %v1606_v38 = vpop.f32.mrf.mxu1 }
 0x16c   : > { %v3271_v39 = vpack.c.bf16 %v2098_v35, %v2097_v33  ;;  %v3411_v40 = vpack.c.bf16 %v2154_v36, %v2153_v34 }
 0x16d   : > { %v1385_v41 = vpop.f32.mrf.mxu0  ;;  %v1609_v42 = vpop.f32.mrf.mxu1 }
 0x16e   : > { %3503 = vst [vmem:[%s4045_s30 + $0x58] sm:$0xff] %v3271_v39   ;;  %3531 = vst [vmem:[%s4045_s30 + $0x138] sm:$0xff] %v3411_v40   ;;  %v2099_v47 = vmax.f32 %v1385_v41, 0.0  ;;  %v2155_v48 = vmax.f32 %v1609_v42, 0.0 }
 0x16f   : > { %v1387_v43 = vpop.f32.mrf.mxu0  ;;  %v1611_v44 = vpop.f32.mrf.mxu1 }
 0x171   : > { %v1388_v45 = vpop.f32.mrf.mxu0  ;;  %v1612_v46 = vpop.f32.mrf.mxu1 }
 0x172   : > { %v2100_v49 = vmax.f32 %v1388_v45, 0.0  ;;  %v2156_v50 = vmax.f32 %v1612_v46, 0.0 }
 0x173   : > { %v1390_v51 = vpop.f32.mrf.mxu0  ;;  %v1614_v52 = vpop.f32.mrf.mxu1 }
 0x174   : > { %v3276_v53 = vpack.c.bf16 %v2100_v49, %v2099_v47  ;;  %v3416_v54 = vpack.c.bf16 %v2156_v50, %v2155_v48 }
 0x175   : > { %v1393_v55 = vpop.f32.mrf.mxu0  ;;  %v1617_v56 = vpop.f32.mrf.mxu1 }
 0x176   : > { %3504 = vst [vmem:[%s4045_s30 + $0x60] sm:$0xff] %v3276_v53   ;;  %3532 = vst [vmem:[%s4045_s30 + $0x140] sm:$0xff] %v3416_v54   ;;  %v2101_v61 = vmax.f32 %v1393_v55, 0.0  ;;  %v2157_v62 = vmax.f32 %v1617_v56, 0.0 }
 0x177   : > { %v1395_v57 = vpop.f32.mrf.mxu0  ;;  %v1619_v58 = vpop.f32.mrf.mxu1 }
 0x179   : > { %v1396_v59 = vpop.f32.mrf.mxu0  ;;  %v1620_v60 = vpop.f32.mrf.mxu1 }
 0x17a   : > { %v2102_v63 = vmax.f32 %v1396_v59, 0.0  ;;  %v2158_v0 = vmax.f32 %v1620_v60, 0.0 }
 0x17b   : > { %v1398_v1 = vpop.f32.mrf.mxu0  ;;  %v1622_v2 = vpop.f32.mrf.mxu1 }
 0x17c   : > { %v3281_v3 = vpack.c.bf16 %v2102_v63, %v2101_v61  ;;  %v3421_v4 = vpack.c.bf16 %v2158_v0, %v2157_v62 }
 0x17d   : > { %v1401_v5 = vpop.f32.mrf.mxu0  ;;  %v1625_v6 = vpop.f32.mrf.mxu1 }
 0x17e   : > { %3505 = vst [vmem:[%s4045_s30 + $0x68] sm:$0xff] %v3281_v3   ;;  %3533 = vst [vmem:[%s4045_s30 + $0x148] sm:$0xff] %v3421_v4   ;;  %v2103_v11 = vmax.f32 %v1401_v5, 0.0  ;;  %v2159_v12 = vmax.f32 %v1625_v6, 0.0 }
 0x17f   : > { %v1403_v7 = vpop.f32.mrf.mxu0  ;;  %v1627_v8 = vpop.f32.mrf.mxu1 }
 0x181   : > { %v1404_v9 = vpop.f32.mrf.mxu0  ;;  %v1628_v10 = vpop.f32.mrf.mxu1 }
 0x182   : > { %v2104_v13 = vmax.f32 %v1404_v9, 0.0  ;;  %v2160_v14 = vmax.f32 %v1628_v10, 0.0 }
 0x183   : > { %v1406_v15 = vpop.f32.mrf.mxu0  ;;  %v1630_v16 = vpop.f32.mrf.mxu1 }
 0x184   : > { %v3286_v17 = vpack.c.bf16 %v2104_v13, %v2103_v11  ;;  %v3426_v18 = vpack.c.bf16 %v2160_v14, %v2159_v12 }
 0x185   : > { %v1409_v19 = vpop.f32.mrf.mxu0  ;;  %v1633_v20 = vpop.f32.mrf.mxu1 }
 0x186   : > { %3506 = vst [vmem:[%s4045_s30 + $0x70] sm:$0xff] %v3286_v17   ;;  %3534 = vst [vmem:[%s4045_s30 + $0x150] sm:$0xff] %v3426_v18   ;;  %v2105_v25 = vmax.f32 %v1409_v19, 0.0  ;;  %v2161_v26 = vmax.f32 %v1633_v20, 0.0 }
 0x187   : > { %v1411_v21 = vpop.f32.mrf.mxu0  ;;  %v1635_v22 = vpop.f32.mrf.mxu1 }
 0x189   : > { %v1412_v23 = vpop.f32.mrf.mxu0  ;;  %v1636_v24 = vpop.f32.mrf.mxu1 }
 0x18a   : > { %v2106_v27 = vmax.f32 %v1412_v23, 0.0  ;;  %v2162_v28 = vmax.f32 %v1636_v24, 0.0 }
 0x18b   : > { %v1414_v29 = vpop.f32.mrf.mxu0  ;;  %v1638_v30 = vpop.f32.mrf.mxu1 }
 0x18c   : > { %v3291_v31 = vpack.c.bf16 %v2106_v27, %v2105_v25  ;;  %v3431_v32 = vpack.c.bf16 %v2162_v28, %v2161_v26 }
 0x18d   : > { %v1417_v33 = vpop.f32.mrf.mxu0  ;;  %v1641_v34 = vpop.f32.mrf.mxu1 }
 0x18e   : > { %3507 = vst [vmem:[%s4045_s30 + $0x78] sm:$0xff] %v3291_v31   ;;  %3535 = vst [vmem:[%s4045_s30 + $0x158] sm:$0xff] %v3431_v32   ;;  %v2107_v39 = vmax.f32 %v1417_v33, 0.0  ;;  %v2163_v40 = vmax.f32 %v1641_v34, 0.0 }
 0x18f   : > { %v1419_v35 = vpop.f32.mrf.mxu0  ;;  %v1643_v36 = vpop.f32.mrf.mxu1 }
 0x191   : > { %v1420_v37 = vpop.f32.mrf.mxu0  ;;  %v1644_v38 = vpop.f32.mrf.mxu1 }
 0x192   : > { %v2108_v41 = vmax.f32 %v1420_v37, 0.0  ;;  %v2164_v42 = vmax.f32 %v1644_v38, 0.0 }
 0x193   : > { %v1422_v43 = vpop.f32.mrf.mxu0  ;;  %v1646_v44 = vpop.f32.mrf.mxu1 }
 0x194   : > { %v3296_v45 = vpack.c.bf16 %v2108_v41, %v2107_v39  ;;  %v3436_v46 = vpack.c.bf16 %v2164_v42, %v2163_v40 }
 0x195   : > { %v1425_v47 = vpop.f32.mrf.mxu0  ;;  %v1649_v48 = vpop.f32.mrf.mxu1 }
 0x196   : > { %3508 = vst [vmem:[%s4045_s30 + $0x80] sm:$0xff] %v3296_v45   ;;  %3536 = vst [vmem:[%s4045_s30 + $0x160] sm:$0xff] %v3436_v46   ;;  %v2109_v53 = vmax.f32 %v1425_v47, 0.0  ;;  %v2165_v54 = vmax.f32 %v1649_v48, 0.0 }
 0x197   : > { %v1427_v49 = vpop.f32.mrf.mxu0  ;;  %v1651_v50 = vpop.f32.mrf.mxu1 }
 0x199   : > { %v1428_v51 = vpop.f32.mrf.mxu0  ;;  %v1652_v52 = vpop.f32.mrf.mxu1 }
 0x19a   : > { %v2110_v55 = vmax.f32 %v1428_v51, 0.0  ;;  %v2166_v56 = vmax.f32 %v1652_v52, 0.0 }
 0x19b   : > { %v1430_v57 = vpop.f32.mrf.mxu0  ;;  %v1654_v58 = vpop.f32.mrf.mxu1 }
 0x19c   : > { %v3301_v59 = vpack.c.bf16 %v2110_v55, %v2109_v53  ;;  %v3441_v60 = vpack.c.bf16 %v2166_v56, %v2165_v54 }
 0x19d   : > { %v1433_v61 = vpop.f32.mrf.mxu0  ;;  %v1657_v62 = vpop.f32.mrf.mxu1 }
 0x19e   : > { %3509 = vst [vmem:[%s4045_s30 + $0x88] sm:$0xff] %v3301_v59   ;;  %3537 = vst [vmem:[%s4045_s30 + $0x168] sm:$0xff] %v3441_v60   ;;  %v2111_v3 = vmax.f32 %v1433_v61, 0.0  ;;  %v2167_v4 = vmax.f32 %v1657_v62, 0.0 }
 0x19f   : > { %v1435_v63 = vpop.f32.mrf.mxu0  ;;  %v1659_v0 = vpop.f32.mrf.mxu1 }
 0x1a1   : > { %v1436_v1 = vpop.f32.mrf.mxu0  ;;  %v1660_v2 = vpop.f32.mrf.mxu1 }
 0x1a2   : > { %v2112_v5 = vmax.f32 %v1436_v1, 0.0  ;;  %v2168_v6 = vmax.f32 %v1660_v2, 0.0 }
 0x1a3   : > { %v1438_v7 = vpop.f32.mrf.mxu0  ;;  %v1662_v8 = vpop.f32.mrf.mxu1 }
 0x1a4   : > { %v3306_v9 = vpack.c.bf16 %v2112_v5, %v2111_v3  ;;  %v3446_v10 = vpack.c.bf16 %v2168_v6, %v2167_v4 }
 0x1a5   : > { %v1441_v11 = vpop.f32.mrf.mxu0  ;;  %v1665_v12 = vpop.f32.mrf.mxu1 }
 0x1a6   : > { %3510 = vst [vmem:[%s4045_s30 + $0x90] sm:$0xff] %v3306_v9   ;;  %3538 = vst [vmem:[%s4045_s30 + $0x170] sm:$0xff] %v3446_v10   ;;  %v2113_v17 = vmax.f32 %v1441_v11, 0.0  ;;  %v2169_v18 = vmax.f32 %v1665_v12, 0.0 }
 0x1a7   : > { %v1443_v13 = vpop.f32.mrf.mxu0  ;;  %v1667_v14 = vpop.f32.mrf.mxu1 }
 0x1a9   : > { %v1444_v15 = vpop.f32.mrf.mxu0  ;;  %v1668_v16 = vpop.f32.mrf.mxu1 }
 0x1aa   : > { %v2114_v19 = vmax.f32 %v1444_v15, 0.0  ;;  %v2170_v20 = vmax.f32 %v1668_v16, 0.0 }
 0x1ab   : > { %v1446_v21 = vpop.f32.mrf.mxu0  ;;  %v1670_v22 = vpop.f32.mrf.mxu1 }
 0x1ac   : > { %v3311_v23 = vpack.c.bf16 %v2114_v19, %v2113_v17  ;;  %v3451_v24 = vpack.c.bf16 %v2170_v20, %v2169_v18 }
 0x1ad   : > { %v1449_v25 = vpop.f32.mrf.mxu0  ;;  %v1673_v26 = vpop.f32.mrf.mxu1 }
 0x1ae   : > { %3511 = vst [vmem:[%s4045_s30 + $0x98] sm:$0xff] %v3311_v23   ;;  %3539 = vst [vmem:[%s4045_s30 + $0x178] sm:$0xff] %v3451_v24   ;;  %v2115_v31 = vmax.f32 %v1449_v25, 0.0  ;;  %v2171_v32 = vmax.f32 %v1673_v26, 0.0 }
 0x1af   : > { %v1451_v27 = vpop.f32.mrf.mxu0  ;;  %v1675_v28 = vpop.f32.mrf.mxu1 }
 0x1b1   : > { %v1452_v29 = vpop.f32.mrf.mxu0  ;;  %v1676_v30 = vpop.f32.mrf.mxu1 }
 0x1b2   : > { %v2116_v33 = vmax.f32 %v1452_v29, 0.0  ;;  %v2172_v34 = vmax.f32 %v1676_v30, 0.0 }
 0x1b3   : > { %v1454_v35 = vpop.f32.mrf.mxu0  ;;  %v1678_v36 = vpop.f32.mrf.mxu1 }
 0x1b4   : > { %v3316_v37 = vpack.c.bf16 %v2116_v33, %v2115_v31  ;;  %v3456_v38 = vpack.c.bf16 %v2172_v34, %v2171_v32 }
 0x1b5   : > { %v1457_v39 = vpop.f32.mrf.mxu0  ;;  %v1681_v40 = vpop.f32.mrf.mxu1 }
 0x1b6   : > { %3512 = vst [vmem:[%s4045_s30 + $0xa0] sm:$0xff] %v3316_v37   ;;  %3540 = vst [vmem:[%s4045_s30 + $0x180] sm:$0xff] %v3456_v38   ;;  %v2117_v45 = vmax.f32 %v1457_v39, 0.0  ;;  %v2173_v46 = vmax.f32 %v1681_v40, 0.0 }
 0x1b7   : > { %v1459_v41 = vpop.f32.mrf.mxu0  ;;  %v1683_v42 = vpop.f32.mrf.mxu1 }
 0x1b9   : > { %v1460_v43 = vpop.f32.mrf.mxu0  ;;  %v1684_v44 = vpop.f32.mrf.mxu1 }
 0x1ba   : > { %v2118_v47 = vmax.f32 %v1460_v43, 0.0  ;;  %v2174_v48 = vmax.f32 %v1684_v44, 0.0 }
 0x1bb   : > { %v1462_v49 = vpop.f32.mrf.mxu0  ;;  %v1686_v50 = vpop.f32.mrf.mxu1 }
 0x1bc   : > { %v3321_v51 = vpack.c.bf16 %v2118_v47, %v2117_v45  ;;  %v3461_v52 = vpack.c.bf16 %v2174_v48, %v2173_v46 }
 0x1bd   : > { %v1465_v53 = vpop.f32.mrf.mxu0  ;;  %v1689_v54 = vpop.f32.mrf.mxu1 }
 0x1be   : > { %3513 = vst [vmem:[%s4045_s30 + $0xa8] sm:$0xff] %v3321_v51   ;;  %3541 = vst [vmem:[%s4045_s30 + $0x188] sm:$0xff] %v3461_v52   ;;  %v2119_v59 = vmax.f32 %v1465_v53, 0.0  ;;  %v2175_v60 = vmax.f32 %v1689_v54, 0.0 }
 0x1bf   : > { %v1467_v55 = vpop.f32.mrf.mxu0  ;;  %v1691_v56 = vpop.f32.mrf.mxu1 }
 0x1c1   : > { %v1468_v57 = vpop.f32.mrf.mxu0  ;;  %v1692_v58 = vpop.f32.mrf.mxu1 }
 0x1c2   : > { %v2120_v61 = vmax.f32 %v1468_v57, 0.0  ;;  %v2176_v62 = vmax.f32 %v1692_v58, 0.0 }
 0x1c3   : > { %v1470_v63 = vpop.f32.mrf.mxu0  ;;  %v1694_v0 = vpop.f32.mrf.mxu1 }
 0x1c4   : > { %v3326_v1 = vpack.c.bf16 %v2120_v61, %v2119_v59  ;;  %v3466_v2 = vpack.c.bf16 %v2176_v62, %v2175_v60 }
 0x1c5   : > { %v1473_v3 = vpop.f32.mrf.mxu0  ;;  %v1697_v4 = vpop.f32.mrf.mxu1 }
 0x1c6   : > { %3514 = vst [vmem:[%s4045_s30 + $0xb0] sm:$0xff] %v3326_v1   ;;  %3542 = vst [vmem:[%s4045_s30 + $0x190] sm:$0xff] %v3466_v2   ;;  %v2121_v9 = vmax.f32 %v1473_v3, 0.0  ;;  %v2177_v10 = vmax.f32 %v1697_v4, 0.0 }
 0x1c7   : > { %v1475_v5 = vpop.f32.mrf.mxu0  ;;  %v1699_v6 = vpop.f32.mrf.mxu1 }
 0x1c9   : > { %v1476_v7 = vpop.f32.mrf.mxu0  ;;  %v1700_v8 = vpop.f32.mrf.mxu1 }
 0x1ca   : > { %v2122_v11 = vmax.f32 %v1476_v7, 0.0  ;;  %v2178_v12 = vmax.f32 %v1700_v8, 0.0 }
 0x1cb   : > { %v1478_v13 = vpop.f32.mrf.mxu0  ;;  %v1702_v14 = vpop.f32.mrf.mxu1 }
 0x1cc   : > { %v3331_v15 = vpack.c.bf16 %v2122_v11, %v2121_v9  ;;  %v3471_v16 = vpack.c.bf16 %v2178_v12, %v2177_v10 }
 0x1cd   : > { %v1481_v17 = vpop.f32.mrf.mxu0  ;;  %v1705_v18 = vpop.f32.mrf.mxu1 }
 0x1ce   : > { %3515 = vst [vmem:[%s4045_s30 + $0xb8] sm:$0xff] %v3331_v15   ;;  %3543 = vst [vmem:[%s4045_s30 + $0x198] sm:$0xff] %v3471_v16   ;;  %v2123_v23 = vmax.f32 %v1481_v17, 0.0  ;;  %v2179_v24 = vmax.f32 %v1705_v18, 0.0 }
 0x1cf   : > { %v1483_v19 = vpop.f32.mrf.mxu0  ;;  %v1707_v20 = vpop.f32.mrf.mxu1 }
 0x1d1   : > { %v1484_v21 = vpop.f32.mrf.mxu0  ;;  %v1708_v22 = vpop.f32.mrf.mxu1 }
 0x1d2   : > { %v2124_v25 = vmax.f32 %v1484_v21, 0.0  ;;  %v2180_v26 = vmax.f32 %v1708_v22, 0.0 }
 0x1d3   : > { %v1486_v27 = vpop.f32.mrf.mxu0  ;;  %v1710_v28 = vpop.f32.mrf.mxu1 }
 0x1d4   : > { %v3336_v29 = vpack.c.bf16 %v2124_v25, %v2123_v23  ;;  %v3476_v30 = vpack.c.bf16 %v2180_v26, %v2179_v24 }
 0x1d5   : > { %v1489_v31 = vpop.f32.mrf.mxu0  ;;  %v1713_v32 = vpop.f32.mrf.mxu1 }
 0x1d6   : > { %3516 = vst [vmem:[%s4045_s30 + $0xc0] sm:$0xff] %v3336_v29   ;;  %3544 = vst [vmem:[%s4045_s30 + $0x1a0] sm:$0xff] %v3476_v30   ;;  %v2125_v37 = vmax.f32 %v1489_v31, 0.0  ;;  %v2181_v38 = vmax.f32 %v1713_v32, 0.0 }
 0x1d7   : > { %v1491_v33 = vpop.f32.mrf.mxu0  ;;  %v1715_v34 = vpop.f32.mrf.mxu1 }
 0x1d9   : > { %v1492_v35 = vpop.f32.mrf.mxu0  ;;  %v1716_v36 = vpop.f32.mrf.mxu1 }
 0x1da   : > { %v2126_v39 = vmax.f32 %v1492_v35, 0.0  ;;  %v2182_v40 = vmax.f32 %v1716_v36, 0.0 }
 0x1db   : > { %v1494_v41 = vpop.f32.mrf.mxu0  ;;  %v1718_v42 = vpop.f32.mrf.mxu1 }
 0x1dc   : > { %v3341_v43 = vpack.c.bf16 %v2126_v39, %v2125_v37  ;;  %v3481_v44 = vpack.c.bf16 %v2182_v40, %v2181_v38 }
 0x1dd   : > { %v1497_v45 = vpop.f32.mrf.mxu0  ;;  %v1721_v46 = vpop.f32.mrf.mxu1 }
 0x1de   : > { %3517 = vst [vmem:[%s4045_s30 + $0xc8] sm:$0xff] %v3341_v43   ;;  %3545 = vst [vmem:[%s4045_s30 + $0x1a8] sm:$0xff] %v3481_v44   ;;  %v2127_v51 = vmax.f32 %v1497_v45, 0.0  ;;  %v2183_v52 = vmax.f32 %v1721_v46, 0.0 }
 0x1df   : > { %v1499_v47 = vpop.f32.mrf.mxu0  ;;  %v1723_v48 = vpop.f32.mrf.mxu1 }
 0x1e1   : > { %v1500_v49 = vpop.f32.mrf.mxu0  ;;  %v1724_v50 = vpop.f32.mrf.mxu1 }
 0x1e2   : > { %v2128_v53 = vmax.f32 %v1500_v49, 0.0  ;;  %v2184_v54 = vmax.f32 %v1724_v50, 0.0 }
 0x1e3   : > { %v1502_v55 = vpop.f32.mrf.mxu0  ;;  %v1726_v56 = vpop.f32.mrf.mxu1 }
 0x1e4   : > { %v3346_v57 = vpack.c.bf16 %v2128_v53, %v2127_v51  ;;  %v3486_v58 = vpack.c.bf16 %v2184_v54, %v2183_v52 }
 0x1e5   : > { %v1505_v59 = vpop.f32.mrf.mxu0  ;;  %v1729_v60 = vpop.f32.mrf.mxu1 }
 0x1e6   : > { %3518 = vst [vmem:[%s4045_s30 + $0xd0] sm:$0xff] %v3346_v57   ;;  %3546 = vst [vmem:[%s4045_s30 + $0x1b0] sm:$0xff] %v3486_v58   ;;  %v2129_v1 = vmax.f32 %v1505_v59, 0.0  ;;  %v2185_v2 = vmax.f32 %v1729_v60, 0.0 }
 0x1e7   : > { %v1507_v61 = vpop.f32.mrf.mxu0  ;;  %v1731_v62 = vpop.f32.mrf.mxu1 }
 0x1e9   : > { %v1508_v63 = vpop.f32.mrf.mxu0  ;;  %v1732_v0 = vpop.f32.mrf.mxu1 }
 0x1ea   : > { %v2130_v3 = vmax.f32 %v1508_v63, 0.0  ;;  %v2186_v4 = vmax.f32 %v1732_v0, 0.0 }
 0x1eb   : > { %v1510_v5 = vpop.f32.mrf.mxu0  ;;  %v1734_v6 = vpop.f32.mrf.mxu1 }
 0x1ec   : > { %v3351_v7 = vpack.c.bf16 %v2130_v3, %v2129_v1  ;;  %v3491_v8 = vpack.c.bf16 %v2186_v4, %v2185_v2 }
 0x1ee   : > { %3519 = vst [vmem:[%s4045_s30 + $0xd8] sm:$0xff] %v3351_v7   ;;  %3547 = vst [vmem:[%s4045_s30 + $0x1b8] sm:$0xff] %v3491_v8  }
 0x1ef PF: > { %s12_s11 = sadd.s32 1, %s3811_s11   ;;  %s4121_s9 = smov %s3807_s10 }
 0x1f0   : > { %p9_p5 = scmp.ge.s32.totalorder %s12_s11, 30   ;;  %s4122_s10 = smov %s4124_s12 }
 0x1f2   :  { %11 = sbr.rel (!%p9_p5) target bundleno = 2 (0x2), region = 69 }

</bundles_post_ra>
